<compile_context>
chip_gen: v5e
topology: v5e:2x2
jax: 0.10.0
libtpu: 0.0.40
codegen_flags: <defaults>
</compile_context>

<pallas_src>
import functools

import jax
import jax.numpy as jnp
import numpy as np
from jax.experimental import pallas as pl
from jax.experimental.pallas import tpu as pltpu

NEG_RATIO = 3.0
EPS = 1e-5

_LANES = 512          # minor dim: multiple of 128 -> lane-dense loads/stores
_ROW_BLOCK = 512      # 512x512 f32 block = 1 MiB; whole pipeline < 8 MiB VMEM
_NSPLIT = 2           # leading "parallel" grid axis (2 TCs on v7x)


def _bce_body(pred_ref, gt_ref, mask_ref, neg_ref, stats_ref, loss_ref):
    i = pl.program_id(1)                      # innermost "arbitrary" axis

    pred = pred_ref[...]                      # f32
    gt = gt_ref[...].astype(jnp.float32)      # bf16/uint8 {0,1} -> f32 on load
    mask = mask_ref[...].astype(jnp.float32)

    one_minus_gt = 1.0 - gt
    # torch `.byte()` truncates toward zero; inputs are non-negative -> floor.
    positive = jnp.floor(gt * mask)
    negative = jnp.floor(one_minus_gt * mask)

    # F.binary_cross_entropy(reduction='none'); PyTorch clamps log at -100.
    log_p = jnp.maximum(jnp.log(pred), -100.0)
    log_1mp = jnp.maximum(jnp.log(1.0 - pred), -100.0)
    loss = -(gt * log_p + one_minus_gt * log_1mp)

    neg_ref[...] = loss * negative            # needed for the exact top-k
    if loss_ref is not None:                  # only when return_origin=True
        loss_ref[...] = loss

    pos_sum = jnp.sum(loss * positive)
    pos_cnt = jnp.sum(positive)
    neg_cnt = jnp.sum(negative)

    # Consolidated scalar stats: accumulate into the resident (1,8,128) output
    # block (same block index for every step of the arbitrary axis).
    flat_idx = (jax.lax.broadcasted_iota(jnp.int32, stats_ref.shape, 1) * 128
                + jax.lax.broadcasted_iota(jnp.int32, stats_ref.shape, 2))
    contrib = (jnp.where(flat_idx == 0, pos_sum, 0.0)
               + jnp.where(flat_idx == 1, pos_cnt, 0.0)
               + jnp.where(flat_idx == 2, neg_cnt, 0.0))

    @pl.when(i == 0)
    def _init():
        stats_ref[...] = jnp.zeros_like(stats_ref)

    stats_ref[...] += contrib


def _bce_kernel(pred_ref, gt_ref, mask_ref, neg_ref, stats_ref):
    _bce_body(pred_ref, gt_ref, mask_ref, neg_ref, stats_ref, None)


def _bce_kernel_with_loss(pred_ref, gt_ref, mask_ref, neg_ref, stats_ref, loss_ref):
    _bce_body(pred_ref, gt_ref, mask_ref, neg_ref, stats_ref, loss_ref)


def balance_cross_entropy_loss(pred, gt, mask,
                               neg_ratio=NEG_RATIO, eps=EPS,
                               return_origin=False):
    """pred: (N,1,H,W) f32 probabilities; gt: (N,1,H,W); mask: (N,H,W).

    gt / mask are assumed {0,1}-valued; pass them as bfloat16 (or uint8) to
    halve their HBM traffic — the kernel casts to f32 internally.
    """
    N, C, H, W = pred.shape
    assert C == 1

    L = N * H * W
    rows = pl.cdiv(L, _LANES)
    row_block = min(_ROW_BLOCK, max(8, ((rows + 7) // 8) * 8))
    blocks = pl.cdiv(rows, row_block)
    blocks = ((blocks + _NSPLIT - 1) // _NSPLIT) * _NSPLIT
    R = blocks * row_block
    steps = blocks // _NSPLIT
    Lp = R * _LANES

    def _prep(x, pad_value):
        flat = x.reshape(-1)
        if Lp != L:
            # Padding uses mask=0 (and pred=0.5), so it contributes nothing to
            # any sum/count and only adds zeros to the top-k candidate pool.
            flat = jnp.pad(flat, (0, Lp - L), constant_values=pad_value)
        return flat.reshape(R, _LANES)

    p2 = _prep(pred[:, 0].astype(jnp.float32), 0.5)
    g2 = _prep(gt[:, 0], 0)       # keep caller dtype (bf16/uint8 recommended)
    m2 = _prep(mask, 0)

    data_spec = pl.BlockSpec((row_block, _LANES),
                             lambda p, i, s=steps: (p * s + i, 0))
    stats_spec = pl.BlockSpec((1, 8, 128), lambda p, i: (p, 0, 0))

    out_shape = [jax.ShapeDtypeStruct((R, _LANES), jnp.float32),      # neg loss
                 jax.ShapeDtypeStruct((_NSPLIT, 8, 128), jnp.float32)]  # stats
    out_specs = [data_spec, stats_spec]
    kernel = _bce_kernel
    if return_origin:
        out_shape.append(jax.ShapeDtypeStruct((R, _LANES), jnp.float32))
        out_specs.append(data_spec)
        kernel = _bce_kernel_with_loss

    outs = pl.pallas_call(
        kernel,
        grid=(_NSPLIT, steps),
        in_specs=[data_spec, data_spec, data_spec],
        out_specs=tuple(out_specs),
        out_shape=tuple(out_shape),
        compiler_params=pltpu.CompilerParams(
            dimension_semantics=("parallel", "arbitrary"),
            vmem_limit_bytes=32 * 1024 * 1024,
        ),
    )(p2, g2, m2)

    neg_loss2 = outs[0]
    stats = outs[1].sum(axis=0).reshape(-1)
    pos_sum, pos_cnt, neg_total = stats[0], stats[1], stats[2]

    # neg_count = min(int(negative.sum()), int(pos_count * neg_ratio))
    neg_count = jnp.minimum(neg_total, jnp.floor(pos_cnt * neg_ratio))
    k_i = neg_count.astype(jnp.int32)

    # Exact data-dependent top-k sum via ascending sort + int32 cutoff.
    flat = neg_loss2.reshape(-1)
    n_flat = flat.shape[0]
    sorted_asc = jnp.sort(flat)
    idx = jnp.arange(n_flat, dtype=jnp.int32)
    topk_sum = jnp.sum(jnp.where(idx >= n_flat - k_i, sorted_asc, 0.0))

    balance_loss = (pos_sum + topk_sum) / (pos_cnt + neg_count + eps)

    if return_origin:
        loss_map = outs[2].reshape(-1)[:L].reshape(N, H, W)
        return balance_loss, loss_map
    return balance_loss


def _reference(pred, gt, mask, neg_ratio=NEG_RATIO, eps=EPS):
    pred = np.asarray(jnp.asarray(pred, jnp.float32))
    gt = np.asarray(jnp.asarray(gt, jnp.float32))
    mask = np.asarray(jnp.asarray(mask, jnp.float32))
    positive = np.trunc(gt[:, 0] * mask)
    negative = np.trunc((1.0 - gt[:, 0]) * mask)
    pos_count = int(positive.sum())
    neg_count = min(int(negative.sum()), int(pos_count * neg_ratio))
    log_p = np.maximum(np.log(pred), -100.0)
    log_1mp = np.maximum(np.log(1.0 - pred), -100.0)
    loss = -(gt * log_p + (1.0 - gt) * log_1mp)[:, 0]
    pos_loss = loss * positive
    neg_vals = np.sort((loss * negative).reshape(-1))[::-1][:neg_count]
    return (pos_loss.sum() + neg_vals.sum()) / (pos_count + neg_count + eps)


if __name__ == "__main__":
    key = jax.random.PRNGKey(0)
    k1, k2, k3 = jax.random.split(key, 3)
    N, H, W = 2, 16, 16
    pred = jax.random.uniform(k1, (N, 1, H, W), jnp.float32,
                              minval=0.01, maxval=0.99)
    # Binary maps passed as bf16 to exercise the reduced-bandwidth input path.
    gt = jax.random.bernoulli(k2, 0.3, (N, 1, H, W)).astype(jnp.bfloat16)
    mask = jax.random.bernoulli(k3, 0.8, (N, H, W)).astype(jnp.bfloat16)

    fn = jax.jit(balance_cross_entropy_loss,
                 static_argnames=("neg_ratio", "eps", "return_origin"))
    out = jax.block_until_ready(fn(pred, gt, mask))
    ref = _reference(pred, gt, mask)
    np.testing.assert_allclose(np.asarray(out), ref, rtol=1e-5, atol=1e-5)

    # Exercise the return_origin path (extra loss-map output) once.
    out2, loss_map = balance_cross_entropy_loss(pred, gt, mask, return_origin=True)
    jax.block_until_ready((out2, loss_map))
    assert loss_map.shape == (N, H, W)
    np.testing.assert_allclose(np.asarray(out2), ref, rtol=1e-5, atol=1e-5)

    print("KERNEL_OK")
</pallas_src>

<mosaic_0001>
module attributes {stable_mosaic.version = 11 : i64} {
  func.func @_bce_kernel(%arg0: i32, %arg1: i32, %arg2: memref<8x512xf32, #tpu.memory_space<vmem>>, %arg3: memref<8x512xbf16, #tpu.memory_space<vmem>>, %arg4: memref<8x512xbf16, #tpu.memory_space<vmem>>, %arg5: memref<8x512xf32, #tpu.memory_space<vmem>>, %arg6: memref<1x8x128xf32, #tpu.memory_space<vmem>>) attributes {dimension_semantics = [#tpu.dimension_semantics<parallel>, #tpu.dimension_semantics<arbitrary>], iteration_bounds = array<i64: 2, 1>, scalar_prefetch = 0 : i64, scratch_operands = 0 : i64, tpu.core_type = #tpu.core_type<tc>, window_params = [{transform_indices = @transform_0, window_bounds = array<i64: 8, 512>}, {transform_indices = @transform_1, window_bounds = array<i64: 8, 512>}, {transform_indices = @transform_2, window_bounds = array<i64: 8, 512>}, {transform_indices = @transform_3, window_bounds = array<i64: 8, 512>}, {transform_indices = @transform_4, window_bounds = array<i64: 1, 8, 128>}]} {
    %c0 = arith.constant 0 : index
    %c0_0 = arith.constant 0 : index
    %0 = vector.load %arg2[%c0, %c0_0] : memref<8x512xf32, #tpu.memory_space<vmem>>, vector<8x512xf32>
    %c0_1 = arith.constant 0 : index
    %c0_2 = arith.constant 0 : index
    %1 = vector.load %arg3[%c0_1, %c0_2] : memref<8x512xbf16, #tpu.memory_space<vmem>>, vector<8x512xbf16>
    %2 = arith.extf %1 : vector<8x512xbf16> to vector<8x512xf32>
    %c0_3 = arith.constant 0 : index
    %c0_4 = arith.constant 0 : index
    %3 = vector.load %arg4[%c0_3, %c0_4] : memref<8x512xbf16, #tpu.memory_space<vmem>>, vector<8x512xbf16>
    %4 = arith.extf %3 : vector<8x512xbf16> to vector<8x512xf32>
    %cst = arith.constant 1.000000e+00 : f32
    %5 = vector.broadcast %cst : f32 to vector<8x512xf32>
    %6 = arith.subf %5, %2 : vector<8x512xf32>
    %7 = arith.mulf %2, %4 : vector<8x512xf32>
    %8 = math.floor %7 : vector<8x512xf32>
    %9 = arith.mulf %6, %4 : vector<8x512xf32>
    %10 = math.floor %9 : vector<8x512xf32>
    %11 = math.log %0 : vector<8x512xf32>
    %cst_5 = arith.constant -1.000000e+02 : f32
    %12 = vector.broadcast %cst_5 : f32 to vector<8x512xf32>
    %13 = arith.maximumf %11, %12 : vector<8x512xf32>
    %cst_6 = arith.constant 1.000000e+00 : f32
    %14 = vector.broadcast %cst_6 : f32 to vector<8x512xf32>
    %15 = arith.subf %14, %0 : vector<8x512xf32>
    %16 = math.log %15 : vector<8x512xf32>
    %cst_7 = arith.constant -1.000000e+02 : f32
    %17 = vector.broadcast %cst_7 : f32 to vector<8x512xf32>
    %18 = arith.maximumf %16, %17 : vector<8x512xf32>
    %19 = arith.mulf %2, %13 : vector<8x512xf32>
    %20 = arith.mulf %6, %18 : vector<8x512xf32>
    %21 = arith.addf %19, %20 : vector<8x512xf32>
    %cst_8 = arith.constant 0.000000e+00 : f32
    %22 = vector.broadcast %cst_8 : f32 to vector<8x512xf32>
    %23 = arith.subf %22, %21 : vector<8x512xf32>
    %24 = arith.mulf %23, %10 : vector<8x512xf32>
    %c0_9 = arith.constant 0 : index
    %c0_10 = arith.constant 0 : index
    %25 = vector.load %arg5[%c0_9, %c0_10] : memref<8x512xf32, #tpu.memory_space<vmem>>, vector<8x512xf32>
    tpu.vector_store %arg5[%c0_9, %c0_10], %24 {strides = array<i32>} : memref<8x512xf32, #tpu.memory_space<vmem>>, vector<8x512xf32>,
    %26 = arith.mulf %23, %8 : vector<8x512xf32>
    %27 = vector.shape_cast %26 : vector<8x512xf32> to vector<1x8x512xf32>
    %cst_11 = arith.constant dense<0.000000e+00> : vector<1xf32>
    %28 = vector.multi_reduction <add>, %27, %cst_11 [1, 2] : vector<1x8x512xf32> to vector<1xf32>
    %29 = vector.shape_cast %28 : vector<1xf32> to vector<1x1x1xf32>
    %30 = vector.extract %29[0, 0, 0] : f32 from vector<1x1x1xf32>
    %31 = vector.shape_cast %8 : vector<8x512xf32> to vector<1x8x512xf32>
    %cst_12 = arith.constant dense<0.000000e+00> : vector<1xf32>
    %32 = vector.multi_reduction <add>, %31, %cst_12 [1, 2] : vector<1x8x512xf32> to vector<1xf32>
    %33 = vector.shape_cast %32 : vector<1xf32> to vector<1x1x1xf32>
    %34 = vector.extract %33[0, 0, 0] : f32 from vector<1x1x1xf32>
    %35 = vector.shape_cast %10 : vector<8x512xf32> to vector<1x8x512xf32>
    %cst_13 = arith.constant dense<0.000000e+00> : vector<1xf32>
    %36 = vector.multi_reduction <add>, %35, %cst_13 [1, 2] : vector<1x8x512xf32> to vector<1xf32>
    %37 = vector.shape_cast %36 : vector<1xf32> to vector<1x1x1xf32>
    %38 = vector.extract %37[0, 0, 0] : f32 from vector<1x1x1xf32>
    %39 = tpu.iota {dimensions = array<i32: 1>} : vector<1x8x128xi32>
    %c128_i32 = arith.constant 128 : i32
    %40 = vector.broadcast %c128_i32 : i32 to vector<1x8x128xi32>
    %41 = arith.muli %39, %40 : vector<1x8x128xi32>
    %42 = tpu.iota {dimensions = array<i32: 2>} : vector<1x8x128xi32>
    %43 = arith.addi %41, %42 : vector<1x8x128xi32>
    %c0_i32 = arith.constant 0 : i32
    %44 = vector.broadcast %c0_i32 : i32 to vector<1x8x128xi32>
    %45 = arith.cmpi eq, %43, %44 : vector<1x8x128xi32>
    %cst_14 = arith.constant 0.000000e+00 : f32
    %46 = vector.broadcast %30 : f32 to vector<1x8x128xf32>
    %47 = vector.broadcast %cst_14 : f32 to vector<1x8x128xf32>
    %48 = arith.select %45, %46, %47 : vector<1x8x128xi1>, vector<1x8x128xf32>
    %c1_i32 = arith.constant 1 : i32
    %49 = vector.broadcast %c1_i32 : i32 to vector<1x8x128xi32>
    %50 = arith.cmpi eq, %43, %49 : vector<1x8x128xi32>
    %cst_15 = arith.constant 0.000000e+00 : f32
    %51 = vector.broadcast %34 : f32 to vector<1x8x128xf32>
    %52 = vector.broadcast %cst_15 : f32 to vector<1x8x128xf32>
    %53 = arith.select %50, %51, %52 : vector<1x8x128xi1>, vector<1x8x128xf32>
    %54 = arith.addf %48, %53 : vector<1x8x128xf32>
    %c2_i32 = arith.constant 2 : i32
    %55 = vector.broadcast %c2_i32 : i32 to vector<1x8x128xi32>
    %56 = arith.cmpi eq, %43, %55 : vector<1x8x128xi32>
    %cst_16 = arith.constant 0.000000e+00 : f32
    %57 = vector.broadcast %38 : f32 to vector<1x8x128xf32>
    %58 = vector.broadcast %cst_16 : f32 to vector<1x8x128xf32>
    %59 = arith.select %56, %57, %58 : vector<1x8x128xi1>, vector<1x8x128xf32>
    %60 = arith.addf %54, %59 : vector<1x8x128xf32>
    %c0_i32_17 = arith.constant 0 : i32
    %61 = arith.cmpi eq, %arg1, %c0_i32_17 : i32
    %62 = arith.extui %61 : i1 to i32
    %c0_i32_18 = arith.constant 0 : i32
    %63 = arith.cmpi ne, %62, %c0_i32_18 : i32
    scf.if %63 {
      %cst_25 = arith.constant 0.000000e+00 : f32
      %67 = vector.broadcast %cst_25 : f32 to vector<1x8x128xf32>
      %c0_26 = arith.constant 0 : index
      %c0_27 = arith.constant 0 : index
      %c0_28 = arith.constant 0 : index
      %68 = vector.load %arg6[%c0_26, %c0_27, %c0_28] : memref<1x8x128xf32, #tpu.memory_space<vmem>>, vector<1x8x128xf32>
      tpu.vector_store %arg6[%c0_26, %c0_27, %c0_28], %67 {strides = array<i32>} : memref<1x8x128xf32, #tpu.memory_space<vmem>>, vector<1x8x128xf32>,
    } else {
    }
    %c0_19 = arith.constant 0 : index
    %c0_20 = arith.constant 0 : index
    %c0_21 = arith.constant 0 : index
    %64 = vector.load %arg6[%c0_19, %c0_20, %c0_21] : memref<1x8x128xf32, #tpu.memory_space<vmem>>, vector<1x8x128xf32>
    %65 = arith.addf %64, %60 : vector<1x8x128xf32>
    %c0_22 = arith.constant 0 : index
    %c0_23 = arith.constant 0 : index
    %c0_24 = arith.constant 0 : index
    %66 = vector.load %arg6[%c0_22, %c0_23, %c0_24] : memref<1x8x128xf32, #tpu.memory_space<vmem>>, vector<1x8x128xf32>
    tpu.vector_store %arg6[%c0_22, %c0_23, %c0_24], %65 {strides = array<i32>} : memref<1x8x128xf32, #tpu.memory_space<vmem>>, vector<1x8x128xf32>,
    return
  }
  func.func @transform_0(%arg0: i32, %arg1: i32) -> (i32, i32) {
    %c1_i32 = arith.constant 1 : i32
    %0 = arith.muli %arg0, %c1_i32 : i32
    %1 = arith.addi %0, %arg1 : i32
    %c0_i32 = arith.constant 0 : i32
    %c0_i32_0 = arith.constant 0 : i32
    return %1, %c0_i32 : i32, i32
  }
  func.func @transform_1(%arg0: i32, %arg1: i32) -> (i32, i32) {
    %c1_i32 = arith.constant 1 : i32
    %0 = arith.muli %arg0, %c1_i32 : i32
    %1 = arith.addi %0, %arg1 : i32
    %c0_i32 = arith.constant 0 : i32
    %c0_i32_0 = arith.constant 0 : i32
    return %1, %c0_i32 : i32, i32
  }
  func.func @transform_2(%arg0: i32, %arg1: i32) -> (i32, i32) {
    %c1_i32 = arith.constant 1 : i32
    %0 = arith.muli %arg0, %c1_i32 : i32
    %1 = arith.addi %0, %arg1 : i32
    %c0_i32 = arith.constant 0 : i32
    %c0_i32_0 = arith.constant 0 : i32
    return %1, %c0_i32 : i32, i32
  }
  func.func @transform_3(%arg0: i32, %arg1: i32) -> (i32, i32) {
    %c1_i32 = arith.constant 1 : i32
    %0 = arith.muli %arg0, %c1_i32 : i32
    %1 = arith.addi %0, %arg1 : i32
    %c0_i32 = arith.constant 0 : i32
    %c0_i32_0 = arith.constant 0 : i32
    return %1, %c0_i32 : i32, i32
  }
  func.func @transform_4(%arg0: i32, %arg1: i32) -> (i32, i32, i32) {
    %c0_i32 = arith.constant 0 : i32
    %c0_i32_0 = arith.constant 0 : i32
    %c0_i32_1 = arith.constant 0 : i32
    return %arg0, %c0_i32, %c0_i32_0 : i32, i32, i32
  }
}

</mosaic_0001>

<bundles_post_ra>
// kernel: squeeze.5
= control target key start
LH: loop header
LB: loop body
LE: loop exit
PB: predicated region body
PF: predicated region fallthrough
CT: control target
= control target key end

     0   :  { %s67_s8 = smov 112   ;;  %s68_s11 = smov 80   ;;  %vm3_vm0 = vcmask 130048   ;;  %vm9_vm1 = vcmask 1048448   ;;  %vm15_vm2 = vcmask 917248   ;;  %vm21_vm3 = vcmask 786048   ;;  %s111_s0 = inlined_call_operand.vmem [shape: f32[2,1,16,16], index: 0, kind: input, shape index: {}]   ;;  %s112_s1 = inlined_call_operand.vmem [shape: f32[512], index: 1, kind: output, shape index: {}]  }
   0x1   :  { %v53_v0 = vld [vmem:[%s111_s0 + $0x7] ss:$8 sm:$0xf]   ;;  %v55_v1 = vld [vmem:[%s111_s0 + $0x5] ss:$8 sm:$0xf]  }
   0x2   :  { %7 = vrot.lane.b32.xlu0 %v53_v0, %s67_s8  ;;  %19 = vrot.lane.b32.xlu1 %v55_v1, %s68_s11  ;;  %v57_v2 = vld [vmem:[%s111_s0 + $0x3] ss:$8 sm:$0xf]   ;;  %s69_s14 = smov 48   ;;  %s70_s19 = smov 96   ;;  %vm27_vm4 = vcmask 654848  }
   0x3   :  { %31 = vrot.lane.b32.xlu2 %v57_v2, %s69_s14  ;;  %v54_v3 = vld [vmem:[%s111_s0 + $0x6] ss:$8 sm:$0xf]   ;;  %v56_v4 = vld [vmem:[%s111_s0 + $0x4] ss:$8 sm:$0xf]  }
   0x4   :  { %s71_s20 = smov 64   ;;  %v58_v5 = vld [vmem:[%s111_s0 + $0x2] ss:$8 sm:$0xf]   ;;  %s72_s23 = smov 32   ;;  %vm33_vm5 = vcmask 523648  }
   0x5   :  { %v59_v6 = vld [vmem:[%s111_s0 + $0x1] ss:$8 sm:$0xf]   ;;  %s73_s26 = smov 16   ;;  %vm39_vm6 = vcmask 392448   ;;  %vm45_vm7 = vcmask 261248  }
   0x6   :  { %v2_v7 = vld [vmem:[%s111_s0] ss:$8 sm:$0xf]  }
   0x7   :  { %4 = vst.msk [vmem:[#allocation0] sm:$0xf] %vm3_vm0, %v2_v7  }
   0xa   :  { %13 = vrot.lane.b32.xlu0 %v54_v3, %s70_s19  ;;  %25 = vrot.lane.b32.xlu1 %v56_v4, %s71_s20 }
   0xb   :  { %37 = vrot.lane.b32.xlu2 %v58_v5, %s72_s23 }
  0x12   :  { %43 = vrot.lane.b32.xlu0 %v59_v6, %s73_s26 }
  0x5d   :  { %v32_v8 = vpop.permute.xlu2 %31  }
  0x65   :  { %v38_v9 = vpop.permute.xlu2 %37  }
  0x74   :  { %v8_v10 = vpop.permute.xlu0 %7   ;;  %v20_v11 = vpop.permute.xlu1 %19  }
  0x75   :  { %10 = vst.msk [vmem:[#allocation0] sm:$0xf] %vm9_vm1, %v8_v10  }
  0x7c   :  { %v14_v12 = vpop.permute.xlu0 %13   ;;  %v26_v13 = vpop.permute.xlu1 %25  }
  0x7d   :  { %16 = vst.msk [vmem:[#allocation0] sm:$0xf] %vm15_vm2, %v14_v12  }
  0x7e   :  { %22 = vst.msk [vmem:[#allocation0] sm:$0xf] %vm21_vm3, %v20_v11  }
  0x7f   :  { %28 = vst.msk [vmem:[#allocation0] sm:$0xf] %vm27_vm4, %v26_v13  }
  0x80   :  { %34 = vst.msk [vmem:[#allocation0] sm:$0xf] %vm33_vm5, %v32_v8  }
  0x81   :  { %40 = vst.msk [vmem:[#allocation0] sm:$0xf] %vm39_vm6, %v38_v9  }
  0x84   :  { %v44_v14 = vpop.permute.xlu0 %43  }
  0x85   :  { %46 = vst.msk [vmem:[#allocation0] sm:$0xf] %vm45_vm7, %v44_v14  }
  0x8c   :  { %v49_v15 = vld [vmem:[#allocation0] sm:$0xf] }
  0x8d   :  { %52 = vst [vmem:[%s112_s1] sm:$0xf] %v49_v15 }

// kernel: squeeze.6
= control target key start
LH: loop header
LB: loop body
LE: loop exit
PB: predicated region body
PF: predicated region fallthrough
CT: control target
= control target key end

     0   :  { %2 = vsyncpa [#allocation1], 0  ;;  %s169_s8 = smov [#allocation0]   ;;  %s193_s0 = inlined_call_operand.hbm [shape: bf16[2,1,16,16], index: 0, kind: input, shape index: {}]   ;;  %s194_s1 = inlined_call_operand.vmem [shape: bf16[512], index: 1, kind: output, shape index: {}]  }
   0x1   :  { %s6_s0 = sshll.u32 %s193_s0, 4  ;;  %s8_s9 = sshll.u32 %s169_s8, 4  ;;  %s7_s0 = int_to_ptr.hbm [resolvable:$true] %s6_s0  ;;  %s9_s9 = int_to_ptr.vmem [resolvable:$true] %s8_s9 }
   0x2   :  { %11 = dma.hbm_to_vmem [thread:$0]  %s7_s0, 256, %s9_s9, [#allocation1]  }
   0x3   :  { %167 = dma.done.wait [#allocation1], 256  }
   0x4   :  { %168 = vsyncadd [#allocation1], 4294967040  ;;  %v128_v0 = vld [vmem:[#allocation0 + $0x8] sm:$0xff]   ;;  %v132_v1 = vld [vmem:[#allocation0] sm:$0xff]   ;;  %s170_s10 = smov 112   ;;  %s171_s11 = smov 80  }
   0x5   :  { %v129_v2 = vunpack.c.l.bf16 %v128_v0  ;;  %v130_v3 = vunpack.c.h.bf16 %v128_v0  ;;  %v134_v4 = vunpack.c.h.bf16 %v132_v1  ;;  %v133_v5 = vunpack.c.l.bf16 %v132_v1  ;;  %s172_s12 = smov 48   ;;  %s173_s13 = smov 96  }
   0x6   :  { %s174_s14 = smov 64   ;;  %s175_s15 = smov 32   ;;  %vm75_vm0 = vcmask 130048   ;;  %vm81_vm1 = vcmask 1048448   ;;  %vm87_vm2 = vcmask 917248   ;;  %vm93_vm3 = vcmask 786048  }
   0x7   :  { %30 = vst [vmem:[#allocation3 + $0x18] sm:$0xff] %v130_v3  ;;  %s176_s16 = smov 16   ;;  %vm99_vm4 = vcmask 654848   ;;  %vm105_vm5 = vcmask 523648   ;;  %vm111_vm6 = vcmask 392448   ;;  %vm117_vm7 = vcmask 261248  }
   0x8   :  { %45 = vst [vmem:[#allocation3 + $0x10] sm:$0xff] %v129_v2 }
   0x9   :  { %60 = vst [vmem:[#allocation3 + $0x8] sm:$0xff] %v134_v4 }
   0xa   :  { %73 = vst [vmem:[#allocation3] sm:$0xff] %v133_v5 }
  0x11   :  { %v78_v6 = vld [vmem:[#allocation3 + $0x7] ss:$8 sm:$0xf]   ;;  %v90_v7 = vld [vmem:[#allocation3 + $0x5] ss:$8 sm:$0xf]  }
  0x12   :  { %79 = vrot.lane.b32.xlu0 %v78_v6, %s170_s10  ;;  %91 = vrot.lane.b32.xlu1 %v90_v7, %s171_s11  ;;  %v102_v8 = vld [vmem:[#allocation3 + $0x3] ss:$8 sm:$0xf]   ;;  %v84_v9 = vld [vmem:[#allocation3 + $0x6] ss:$8 sm:$0xf]  }
  0x13   :  { %103 = vrot.lane.b32.xlu2 %v102_v8, %s172_s12  ;;  %v96_v10 = vld [vmem:[#allocation3 + $0x4] ss:$8 sm:$0xf]   ;;  %v108_v11 = vld [vmem:[#allocation3 + $0x2] ss:$8 sm:$0xf]  }
  0x14   :  { %v114_v12 = vld [vmem:[#allocation3 + $0x1] ss:$8 sm:$0xf]   ;;  %v74_v13 = vld [vmem:[#allocation3] ss:$8 sm:$0xf]  }
  0x15   :  { %76 = vst.msk [vmem:[#allocation2] sm:$0xf] %vm75_vm0, %v74_v13  }
  0x1a   :  { %85 = vrot.lane.b32.xlu0 %v84_v9, %s173_s13  ;;  %97 = vrot.lane.b32.xlu1 %v96_v10, %s174_s14 }
  0x1b   :  { %109 = vrot.lane.b32.xlu2 %v108_v11, %s175_s15 }
  0x22   :  { %115 = vrot.lane.b32.xlu0 %v114_v12, %s176_s16 }
  0x6d   :  { %v104_v14 = vpop.permute.xlu2 %103  }
  0x75   :  { %v110_v15 = vpop.permute.xlu2 %109  }
  0x84   :  { %v80_v16 = vpop.permute.xlu0 %79   ;;  %v92_v17 = vpop.permute.xlu1 %91  }
  0x85   :  { %82 = vst.msk [vmem:[#allocation2] sm:$0xf] %vm81_vm1, %v80_v16  }
  0x8c   :  { %v86_v18 = vpop.permute.xlu0 %85   ;;  %v98_v19 = vpop.permute.xlu1 %97  }
  0x8d   :  { %88 = vst.msk [vmem:[#allocation2] sm:$0xf] %vm87_vm2, %v86_v18  }
  0x8e   :  { %94 = vst.msk [vmem:[#allocation2] sm:$0xf] %vm93_vm3, %v92_v17  }
  0x8f   :  { %100 = vst.msk [vmem:[#allocation2] sm:$0xf] %vm99_vm4, %v98_v19  }
  0x90   :  { %106 = vst.msk [vmem:[#allocation2] sm:$0xf] %vm105_vm5, %v104_v14  }
  0x91   :  { %112 = vst.msk [vmem:[#allocation2] sm:$0xf] %vm111_vm6, %v110_v15  }
  0x94   :  { %v116_v20 = vpop.permute.xlu0 %115  }
  0x95   :  { %118 = vst.msk [vmem:[#allocation2] sm:$0xf] %vm117_vm7, %v116_v20  }
  0x9c   :  { %v121_v21 = vld [vmem:[#allocation2] sm:$0xf] }
  0x9d   :  { %v122_v22 = vpack.c.bf16 0.0, %v121_v21 }
  0x9f   :  { %125 = vst [vmem:[%s194_s1] sm:$0x3] %v122_v22 }
  0xa0   :  { %126 = vsyncpa [#allocation1], 1 }

// kernel: balance_cross_entropy_loss.1
= control target key start
LH: loop header
LB: loop body
LE: loop exit
PB: predicated region body
PF: predicated region fallthrough
CT: control target
= control target key end

     0   :  { %s678_s15 = smov 0   ;;  %s680_s16 = smov 0   ;;  %s773_s0 = inlined_call_operand.vmem [shape: f32[16,512], index: 0, kind: input, shape index: {}]   ;;  %s774_s1 = inlined_call_operand.vmem [shape: bf16[16,512], index: 1, kind: input, shape index: {}]   ;;  %s775_s2 = inlined_call_operand.vmem [shape: bf16[16,512], index: 2, kind: input, shape index: {}]   ;;  %s776_s3 = inlined_call_operand.vmem [shape: f32[16,512], index: 3, kind: output, shape index: {0}]   ;;  %s777_s4 = inlined_call_operand.vmem [shape: f32[2,8,128], index: 4, kind: output, shape index: {1}]  }
   0x1   :  { %s682_s17 = smov 0  }
   0x2 LB: > { %s27_s18 = sadd.s32 1, %s647_s16  ;;  %p566_p0 = scmp.ge.s32.totalorder %s651_s17, 1  ;;  %s651_s17 = sphi %s682_s17, %s15_s17   ;;  %s647_s16 = sphi %s680_s16, %s779_s16   ;;  %s643_s15 = sphi %s678_s15, %s778_s15  }
   0x3   : > { %p29_p1 = scmp.ge.s32.totalorder %s27_s18, 2  ;;  %p211_p2 = scmp.lt.s32.totalorder %s651_s17, 3 }
   0x5   : > { %s781_s18 = smov (%p29_p1, %s27_s18), 0  ;;  %p212_p3 = pnand %p566_p0, %p211_p2 }
   0x6   : > { %p256_p4 = scmp.lt.s32.totalorder (!%p212_p3), %s643_s15, 1 }
   0x7   : > { %215 = sbr.rel (%p212_p3) target bundleno = 241 (0xf1), region = 32 }
   0xc   : > { %s783_s15 = smov (!%p256_p4, %s643_s15), 1 }
   0xd   : > { %s578_s19 = sshll.u32 %s783_s15, 5  ;;  %s579_s20 = sshll.u32 %s783_s15, 4 }
   0xe   : > { %s260_s23 = scalar_lea.vmem %s773_s0, %s578_s19  ;;  %s267_s26 = scalar_lea.vmem %s774_s1, %s579_s20 }
   0xf   : > { %s274_s29 = scalar_lea.vmem %s775_s2, %s579_s20  ;;  %v287_v0 = vld [vmem:[%s260_s23] sm:$0xff]  ;;  %v292_v2 = vld [vmem:[%s267_s26 + $0x8] sm:$0xff]  ;;  %v289_v14 = vld [vmem:[%s260_s23 + $0x10] sm:$0xff]  ;;  %s281_s6 = scalar_lea.vmem %s776_s3, %s578_s19 }
  0x10   : > { %v291_v1 = vld [vmem:[%s267_s26] sm:$0xff]  ;;  %613 = vlog2.f32 %v287_v0  ;;  %v715_v5 = vunpack.c.l.bf16 %v292_v2  ;;  %v717_v6 = vunpack.c.h.bf16 %v292_v2  ;;  %v719_v8 = vld [vmem:[%s274_s29 + $0x8] sm:$0xff]  ;;  %v335_v18 = vsub.f32 1.0, %v287_v0  ;;  %v290_v19 = vld [vmem:[%s260_s23 + $0x18] sm:$0xff]  ;;  %s575_s10 = sshll.u32 %s783_s15, 3 }
  0x11   : > { %v711_v3 = vunpack.c.l.bf16 %v291_v1  ;;  %v713_v4 = vunpack.c.h.bf16 %v291_v1  ;;  %v297_v7 = vld [vmem:[%s274_s29] sm:$0xff]  ;;  %v288_v9 = vld [vmem:[%s260_s23 + $0x8] sm:$0xff]  ;;  %v301_v15 = vunpack.c.l.bf16 %v719_v8  ;;  %v302_v16 = vunpack.c.h.bf16 %v719_v8  ;;  %s286_s13 = scalar_lea.vmem %s777_s4, %s575_s10 }
  0x12   : > { %v299_v10 = vunpack.c.l.bf16 %v297_v7  ;;  %v300_v11 = vunpack.c.h.bf16 %v297_v7  ;;  %v305_v17 = vsub.f32 1.0, %v715_v5  ;;  %v306_v20 = vsub.f32 1.0, %v717_v6 }
  0x13   : > { %v303_v12 = vsub.f32 1.0, %v711_v3  ;;  %v304_v13 = vsub.f32 1.0, %v713_v4  ;;  %615 = vlog2.f32 %v288_v9  ;;  %v336_v24 = vsub.f32 1.0, %v288_v9 }
  0x14   : > { %617 = vlog2.f32 %v289_v14  ;;  %v337_v25 = vsub.f32 1.0, %v289_v14  ;;  %v733_v26 = vmul.f32 %v305_v17, %v301_v15  ;;  %v735_v27 = vmul.f32 %v306_v20, %v302_v16 }
  0x15   : > { %v727_v21 = vmul.f32 %v303_v12, %v299_v10  ;;  %v731_v22 = vmul.f32 %v304_v13, %v300_v11  ;;  %619 = vlog2.f32 %v290_v19  ;;  %v338_v28 = vsub.f32 1.0, %v290_v19 }
  0x16   : > { %v614_v23 = vpop.eup %613  ;;  %621 = vlog2.f32 %v335_v18  ;;  %v321_v31 = vfloor.f32 %v733_v26  ;;  %v322_v33 = vfloor.f32 %v735_v27  ;;  %v307_v53 = vmul.f32 %v299_v10, %v711_v3 }
  0x17   : > { %v319_v29 = vfloor.f32 %v727_v21  ;;  %v320_v30 = vfloor.f32 %v731_v22  ;;  %v324_v32 = vmul.f32 0.6931472, %v614_v23  ;;  %623 = vlog2.f32 %v336_v24 }
  0x18   : > { %625 = vlog2.f32 %v337_v25  ;;  %v308_v57 = vmul.f32 %v300_v11, %v713_v4  ;;  %v309_v61 = vmul.f32 %v301_v15, %v715_v5  ;;  %v310_v1 = vmul.f32 %v302_v16, %v717_v6 }
  0x19   : > { %v403_v34 = vadd.f32 %v320_v30, %v319_v29  ;;  %v616_v35 = vpop.eup %615  ;;  %627 = vlog2.f32 %v338_v28  ;;  %v331_v41 = vmax.f32 %v324_v32, -100.0  ;;  %v311_v8 = vfloor.f32 %v307_v53 }
  0x1a   : > { %v326_v36 = vmul.f32 0.6931472, %v616_v35  ;;  %v618_v38 = vpop.eup %617  ;;  %v312_v11 = vfloor.f32 %v308_v57  ;;  %v313_v15 = vfloor.f32 %v309_v61 }
  0x1b   : > { %v404_v37 = vadd.f32 %v403_v34, %v321_v31  ;;  %v620_v39 = vpop.eup %619  ;;  %v328_v40 = vmul.f32 0.6931472, %v618_v38  ;;  %v351_v56 = vmul.f32 %v331_v41, %v711_v3 }
  0x1c   : > { %v622_v43 = vpop.eup %621  ;;  %v330_v44 = vmul.f32 0.6931472, %v620_v39  ;;  %v332_v45 = vmax.f32 %v326_v36, -100.0  ;;  %v391_v34 = vadd.f32 %v312_v11, %v311_v8 }
  0x1d   : > { %v405_v42 = vadd.f32 %v404_v37, %v322_v33  ;;  %v624_v46 = vpop.eup %623  ;;  %v333_v47 = vmax.f32 %v328_v40, -100.0  ;;  %v340_v48 = vmul.f32 0.6931472, %v622_v43 }
  0x1e   : > { %v626_v49 = vpop.eup %625  ;;  %v334_v50 = vmax.f32 %v330_v44, -100.0  ;;  %v342_v51 = vmul.f32 0.6931472, %v624_v46  ;;  %v352_v60 = vmul.f32 %v332_v45, %v713_v4  ;;  %v392_v36 = vadd.f32 %v391_v34, %v313_v15 }
  0x1f   : > { %406 = vadd.xlane.f32.xlu1 %v405_v42  ;;  %v628_v52 = vpop.eup %627  ;;  %v344_v54 = vmul.f32 0.6931472, %v626_v49  ;;  %v347_v55 = vmax.f32 %v340_v48, -100.0  ;;  %v353_v63 = vmul.f32 %v333_v47, %v715_v5  ;;  %v314_v5 = vfloor.f32 %v310_v1 }
  0x20   : > { %v346_v58 = vmul.f32 0.6931472, %v628_v52  ;;  %v348_v59 = vmax.f32 %v342_v51, -100.0  ;;  %v354_v7 = vmul.f32 %v334_v50, %v717_v6 }
  0x21   : > { %v349_v62 = vmax.f32 %v344_v54, -100.0  ;;  %v355_v0 = vmul.f32 %v347_v55, %v303_v12  ;;  %v415_v54 = vlaneseq }
  0x22   : > { %v350_v2 = vmax.f32 %v346_v58, -100.0  ;;  %v356_v3 = vmul.f32 %v348_v59, %v304_v13 }
  0x23   : > { %v357_v9 = vmul.f32 %v349_v62, %v305_v17  ;;  %v359_v10 = vadd.f32 %v355_v0, %v351_v56  ;;  %v416_v55 = vshrl.u32 %v415_v54, 7  ;;  %v419_v57 = vand.u32 127, %v415_v54 }
  0x24   : > { %v358_v14 = vmul.f32 %v350_v2, %v306_v20  ;;  %v360_v18 = vadd.f32 %v356_v3, %v352_v60 }
  0x25   : > { %v361_v19 = vadd.f32 %v357_v9, %v353_v63  ;;  %v363_v21 = vsub.f32 0.0, %v359_v10  ;;  %v417_v56 = vmul.u32 128, %v416_v55 }
  0x26   : > { %v362_v12 = vadd.f32 %v358_v14, %v354_v7  ;;  %v364_v22 = vsub.f32 0.0, %v360_v18 }
  0x27   : > { %v365_v6 = vsub.f32 0.0, %v361_v19  ;;  %v375_v4 = vmul.f32 %v363_v21, %v311_v8  ;;  %v367_v13 = vmul.f32 %v363_v21, %v319_v29  ;;  %v393_v29 = vadd.f32 %v392_v36, %v314_v5 }
  0x28   : > { %v366_v16 = vsub.f32 0.0, %v362_v12  ;;  %v376_v17 = vmul.f32 %v364_v22, %v312_v11  ;;  %v368_v23 = vmul.f32 %v364_v22, %v320_v30  ;;  %v420_v58 = vadd.s32 %v419_v57, %v417_v56 }
  0x29   : > { %v377_v24 = vmul.f32 %v365_v6, %v313_v15  ;;  %v369_v20 = vmul.f32 %v365_v6, %v321_v31  ;;  %371 = vst [vmem:[%s281_s6] sm:$0xff] %v367_v13 }
  0x2a   : > { %v378_v25 = vmul.f32 %v366_v16, %v314_v5  ;;  %v379_v26 = vadd.f32 %v376_v17, %v375_v4  ;;  %v370_v28 = vmul.f32 %v366_v16, %v322_v33  ;;  %372 = vst [vmem:[%s281_s6 + $0x8] sm:$0xff] %v368_v23  ;;  %vm421_vm0 = vcmp.eq.s32.totalorder %v420_v58, 0 }
  0x2b   : > { %373 = vst [vmem:[%s281_s6 + $0x10] sm:$0xff] %v369_v20  ;;  %vm424_vm1 = vcmp.eq.s32.totalorder %v420_v58, 1  ;;  %vm428_vm2 = vcmp.eq.s32.totalorder %v420_v58, 2 }
  0x2c   : > { %v380_v32 = vadd.f32 %v379_v26, %v377_v24  ;;  %374 = vst [vmem:[%s281_s6 + $0x18] sm:$0xff] %v370_v28 }
  0x2e   : > { %v381_v35 = vadd.f32 %v380_v32, %v378_v25 }
  0x30   : > { %382 = vadd.xlane.f32.xlu0 %v381_v35 }
  0x38   : > { %394 = vadd.xlane.f32.xlu0 %v393_v29 }
  0x92   : > { %v407_v37 = vpop.xlane.xlu1 %406 }
  0x93   : > { %v408_v38 = vrot.slane %v407_v37, 4 }
  0x95   : > { %v409_v40 = vadd.f32 %v408_v38, %v407_v37 }
  0x97   : > { %v410_v27 = vrot.slane %v409_v40, 2 }
  0x99   : > { %v411_v47 = vadd.f32 %v410_v27, %v409_v40 }
  0x9b   : > { %v412_v50 = vrot.slane %v411_v47, 1 }
  0x9d   : > { %v413_v53 = vadd.f32 %v412_v50, %v411_v47 }
  0xa3   : > { %v383_v30 = vpop.xlane.xlu0 %382 }
  0xa4   : > { %v384_v31 = vrot.slane %v383_v30, 4 }
  0xa6   : > { %v385_v39 = vadd.f32 %v384_v31, %v383_v30 }
  0xa8   : > { %v386_v41 = vrot.slane %v385_v39, 2 }
  0xaa   : > { %v387_v42 = vadd.f32 %v386_v41, %v385_v39 }
  0xab   : > { %v395_v33 = vpop.xlane.xlu0 %394 }
  0xac   : > { %v396_v43 = vrot.slane %v395_v33, 4  ;;  %v388_v44 = vrot.slane %v387_v42, 1 }
  0xae   : > { %v397_v45 = vadd.f32 %v396_v43, %v395_v33  ;;  %v389_v46 = vadd.f32 %v388_v44, %v387_v42 }
  0xb0   : > { %v398_v48 = vrot.slane %v397_v45, 2  ;;  %582 = vpush %v389_v46 }
  0xb2   : > { %v399_v49 = vadd.f32 %v398_v48, %v397_v45 }
  0xb4   : > { %v400_v51 = vrot.slane %v399_v49, 1 }
  0xb6   : > { %v401_v52 = vadd.f32 %v400_v51, %v399_v49 }
  0xb8   : > { %584 = vpush %v401_v52 }
  0xb9   : > { %586 = vpush %v413_v53 }
  0xe1   : > { %s583_s7 = spop %582 }
  0xe2   : > { %v422_v59 = vstv %s583_s7 }
  0xe3   : > { %v423_v61 = vsel %vm421_vm0, %v422_v59, 0.0 }
  0xe9   : > { %s585_s8 = spop %584 }
  0xea   : > { %v425_v60 = vstv %s585_s8  ;;  %s587_s9 = spop %586 }
  0xeb   : > { %v426_v62 = vsel %vm424_vm1, %v425_v60, 0.0  ;;  %v429_v63 = vstv %s587_s9 }
  0xec   : > { %v427_v0 = vadd.f32 %v426_v62, %v423_v61  ;;  %v430_v1 = vsel %vm428_vm2, %v429_v63, 0.0 }
  0xee   : > { %v431_v2 = vadd.f32 %v430_v1, %v427_v0 }
  0xf0   : > { %439 = vst [vmem:[%s286_s13] sm:$0xff] %v431_v2 }
  0xf1 PF: > { %s15_s17 = sadd.s32 1, %s651_s17   ;;  %s778_s15 = smov %s647_s16 }
  0xf2   : > { %p12_p5 = scmp.ge.s32.totalorder %s15_s17, 4   ;;  %s779_s16 = smov %s781_s18 }
  0xf4   :  { %14 = sbr.rel (!%p12_p5) target bundleno = 2 (0x2), region = 84 }

</bundles_post_ra>
